<compile_context>
chip_gen: v7x
topology: tpu7x:2x2x1
jax: 0.10.0
libtpu: 0.0.40
codegen_flags: <defaults>
</compile_context>

<pallas_src>
import jax
import jax.numpy as jnp
from jax.experimental import pallas as pl
from jax.experimental.pallas import tpu as pltpu


# ---------------------------------------------------------------------------
# Kernels
# ---------------------------------------------------------------------------

def _ca_kernel(x_ref, w1t_ref, w2t_ref, o_ref):
    # x_ref:   (nb, C, HW)  batch slice, channel-major / spatial-minor (HW on lanes)
    # w1t_ref: (C, Cr)  f32   fc1 weight transposed (PyTorch fc1.weight is (Cr, C, 1, 1))
    # w2t_ref: (Cr, C)  f32   fc2 weight transposed (PyTorch fc2.weight is (C, Cr, 1, 1))
    # o_ref:   (nb, 1, C)     sigmoid(fc2(relu(fc1(avg))) + fc2(relu(fc1(max))))
    xs = x_ref[...]                                          # native dtype, never upcast
    avg = jnp.mean(xs, axis=-1, dtype=jnp.float32)           # (nb, C) f32 accumulation
    mx = jnp.max(xs, axis=-1).astype(jnp.float32)            # (nb, C) exact max

    w1t = w1t_ref[...]                                       # already f32 (cast hoisted)
    w2t = w2t_ref[...]

    def mlp(p):
        h = jnp.maximum(jnp.dot(p, w1t, preferred_element_type=jnp.float32), 0.0)
        return jnp.dot(h, w2t, preferred_element_type=jnp.float32)

    out = jax.nn.sigmoid(mlp(avg) + mlp(mx))                 # (nb, C)
    o_ref[...] = out[:, None, :].astype(o_ref.dtype)


def _make_hw_split_kernel(hw_total, hw_block):
    """Fallback: grid (N, K) over (batch, HW chunks); sum/max accumulated in scratch."""
    ragged = (hw_total % hw_block) != 0

    def kernel(x_ref, w1t_ref, w2t_ref, o_ref, sum_ref, max_ref):
        k = pl.program_id(1)

        @pl.when(k == 0)
        def _():
            sum_ref[...] = jnp.zeros_like(sum_ref)
            max_ref[...] = jnp.full_like(max_ref, -jnp.inf)

        x = x_ref[...]                                       # (1, C, hw_block)
        if ragged:
            # Mask the out-of-bounds lanes of the last (padded) chunk.
            pos = jax.lax.broadcasted_iota(jnp.int32, x.shape, dimension=2) + k * hw_block
            valid = pos < hw_total
            x_sum = jnp.where(valid, x, jnp.zeros_like(x))
            x_max = jnp.where(valid, x, jnp.full_like(x, -jnp.inf))
        else:
            x_sum = x
            x_max = x

        sum_ref[...] += jnp.sum(x_sum, axis=-1, dtype=jnp.float32)              # (1, C)
        max_ref[...] = jnp.maximum(max_ref[...],
                                   jnp.max(x_max, axis=-1).astype(jnp.float32))  # (1, C)

        @pl.when(k == pl.num_programs(1) - 1)
        def _():
            avg = sum_ref[...] * (1.0 / hw_total)
            mx = max_ref[...]
            w1t = w1t_ref[...]
            w2t = w2t_ref[...]

            def mlp(p):
                h = jnp.maximum(jnp.dot(p, w1t, preferred_element_type=jnp.float32), 0.0)
                return jnp.dot(h, w2t, preferred_element_type=jnp.float32)

            out = jax.nn.sigmoid(mlp(avg) + mlp(mx))         # (1, C)
            o_ref[...] = out[:, None, :].astype(o_ref.dtype)

    return kernel


# ---------------------------------------------------------------------------
# Block-size planning
# ---------------------------------------------------------------------------

def _sublane(itemsize):
    # 4-byte dtypes -> 8 sublanes/tile, 2-byte -> 16, 1-byte -> 32
    return max(8, 32 // max(1, itemsize))


def _pad_up(v, m):
    return -(-v // m) * m


def _vmem_plan():
    """Generation-aware (vmem_limit_bytes, x-block budget, minimum grid steps)."""
    try:
        cap = int(pltpu.get_tpu_info().vmem_capacity_bytes)
    except Exception:
        cap = 64 << 20                      # conservative default (v7x per-TC size)
    # ~80% of physical VMEM for the compiler, capped well below any generation's max.
    vmem_limit = min(int(0.80 * cap), 112 << 20)
    # ~80% of that for the double-buffered x blocks (weights/out/scratch are tiny).
    budget = int(0.80 * vmem_limit)
    # 64 MiB parts (v7x) have 2 TensorCores sharing the chip: keep >= 2 steps per core
    # so the "parallel" batch axis still double-buffers after sharding.
    min_steps = 4 if cap <= (64 << 20) else 2
    return vmem_limit, budget, min_steps


# ---------------------------------------------------------------------------
# Wrapper
# ---------------------------------------------------------------------------

def channel_attention(x, w1, w2, *, vmem_budget_bytes=None, block_batch=None):
    """x: (N, C, H, W); w1: (Cr, C) fc1 weight; w2: (C, Cr) fc2 weight.
    Returns (N, C, 1, 1), matching the PyTorch module's output.
    `vmem_budget_bytes` / `block_batch` are tuning/testing overrides."""
    N, C, H, W = x.shape
    if w1.ndim == 4:                         # accept raw Conv2d weights (*, *, 1, 1)
        w1 = w1.reshape(w1.shape[0], w1.shape[1])
        w2 = w2.reshape(w2.shape[0], w2.shape[1])
    Cr = w1.shape[0]
    HW = H * W
    itemsize = x.dtype.itemsize

    # Free reshape (no HBM transpose): NCHW -> (N, C, HW), HW on the lane axis.
    x_r = x.reshape(N, C, HW)
    # Transpose + upcast once here (not per grid step inside the kernel).
    w1_t = jnp.transpose(w1).astype(jnp.float32)             # (C, Cr)  tiny
    w2_t = jnp.transpose(w2).astype(jnp.float32)             # (Cr, C)  tiny

    vmem_limit, budget, min_steps = _vmem_plan()
    if vmem_budget_bytes is not None:
        budget = int(vmem_budget_bytes)

    sub = _sublane(itemsize)
    # Tile-padded VMEM footprint of one batch row: the (C, HW) input slab plus its
    # (1, C) output row (which pads to an (8, >=128) tile).
    in_row = _pad_up(C, sub) * _pad_up(HW, 128) * itemsize
    out_row = 8 * _pad_up(C, 128) * itemsize
    row_bytes = in_row + out_row

    out_shape = jax.ShapeDtypeStruct((N, 1, C), x.dtype)

    if 2 * row_bytes <= budget or block_batch is not None:
        # ---- Path A: whole (C, HW) slab(s) per step, grid over batch ----
        if block_batch is not None:
            nb = max(1, min(int(block_batch), N))
        else:
            nb = max(1, budget // (2 * row_bytes))            # double-buffered
            nb = min(nb, max(1, N // min_steps))              # keep >= min_steps steps
            if nb >= 8:
                nb = (nb // 8) * 8                            # sublane-aligned pooled rows
        grid = (pl.cdiv(N, nb),)                              # ragged last block is OK

        out = pl.pallas_call(
            _ca_kernel,
            out_shape=out_shape,
            grid_spec=pltpu.PrefetchScalarGridSpec(
                num_scalar_prefetch=0,
                grid=grid,
                in_specs=[
                    pl.BlockSpec((nb, C, HW), lambda n: (n, 0, 0)),
                    pl.BlockSpec((C, Cr), lambda n: (0, 0)),
                    pl.BlockSpec((Cr, C), lambda n: (0, 0)),
                ],
                out_specs=pl.BlockSpec((nb, 1, C), lambda n: (n, 0, 0)),
            ),
            compiler_params=pltpu.CompilerParams(
                dimension_semantics=("parallel",),
                vmem_limit_bytes=vmem_limit,
            ),
        )(x_r, w1_t, w2_t)
    else:
        # ---- Path B: spatial split; sum/max accumulated in VMEM scratch ----
        # TODO(synk): pathological shapes where even one 128-lane chunk of all C
        # channels overflows the budget would additionally need a channel split.
        per_chunk = _pad_up(C, sub) * 128 * itemsize          # one 128-lane chunk
        chunks = max(1, (budget - 2 * out_row) // (2 * per_chunk))
        hw_block = min(HW, chunks * 128)
        if HW > 128:
            hw_block = max(128, (hw_block // 128) * 128)      # multiple of 128 (or == HW)
        grid = (N, pl.cdiv(HW, hw_block))

        out = pl.pallas_call(
            _make_hw_split_kernel(HW, hw_block),
            out_shape=out_shape,
            grid_spec=pltpu.PrefetchScalarGridSpec(
                num_scalar_prefetch=0,
                grid=grid,
                in_specs=[
                    pl.BlockSpec((1, C, hw_block), lambda n, k: (n, 0, k)),
                    pl.BlockSpec((C, Cr), lambda n, k: (0, 0)),
                    pl.BlockSpec((Cr, C), lambda n, k: (0, 0)),
                ],
                out_specs=pl.BlockSpec((1, 1, C), lambda n, k: (n, 0, 0)),
                scratch_shapes=[
                    pltpu.VMEM((1, C), jnp.float32),          # running sum
                    pltpu.VMEM((1, C), jnp.float32),          # running max
                ],
            ),
            compiler_params=pltpu.CompilerParams(
                dimension_semantics=("parallel", "arbitrary"),
                vmem_limit_bytes=vmem_limit,
            ),
        )(x_r, w1_t, w2_t)

    return out.reshape(N, C, 1, 1)


def channel_attention_ref(x, w1, w2):
    """Plain-JAX reference mirroring the PyTorch forward."""
    avg = jnp.mean(x, axis=(2, 3))                            # (N, C)
    mx = jnp.max(x, axis=(2, 3))                              # (N, C)

    def mlp(p):
        h = jnp.maximum(p @ w1.T, 0.0)                        # fc1 + relu
        return h @ w2.T                                       # fc2

    out = jax.nn.sigmoid(mlp(avg) + mlp(mx))                  # (N, C)
    return out[:, :, None, None]


if __name__ == "__main__":
    C, ratio = 8, 4
    Cr = C // ratio

    key = jax.random.PRNGKey(0)
    kx, k1, k2, kx2, kx3 = jax.random.split(key, 5)

    # Shapes match nn.Conv2d(.., kernel_size=1, bias=False) weights, squeezed.
    w1 = jax.random.normal(k1, (Cr, C), dtype=jnp.float32) * 0.2   # fc1.weight (Cr, C, 1, 1)
    w2 = jax.random.normal(k2, (C, Cr), dtype=jnp.float32) * 0.2   # fc2.weight (C, Cr, 1, 1)

    # 1) Main path (whole-slab blocks, grid over batch).
    x = jax.random.normal(kx, (2, C, 16, 16), dtype=jnp.float32)
    out = jax.block_until_ready(channel_attention(x, w1, w2))
    ref = channel_attention_ref(x, w1, w2)
    assert out.shape == (2, C, 1, 1)
    assert jnp.allclose(out, ref, atol=1e-5, rtol=1e-5), "path A mismatch vs reference"

    # 2) Forced spatial-split fallback (tiny budget), HW divisible by the chunk.
    out_b = jax.block_until_ready(channel_attention(x, w1, w2, vmem_budget_bytes=16 << 10))
    assert jnp.allclose(out_b, ref, atol=1e-5, rtol=1e-5), "path B mismatch vs reference"

    # 3) Forced spatial-split fallback with a ragged (masked) last HW chunk.
    x2 = jax.random.normal(kx2, (2, C, 10, 20), dtype=jnp.float32)   # HW = 200
    out_c = jax.block_until_ready(channel_attention(x2, w1, w2, vmem_budget_bytes=16 << 10))
    ref_c = channel_attention_ref(x2, w1, w2)
    assert jnp.allclose(out_c, ref_c, atol=1e-5, rtol=1e-5), "ragged-HW mismatch vs reference"

    # 4) Main path with a ragged last batch block (nb does not divide N).
    x3 = jax.random.normal(kx3, (5, C, 16, 16), dtype=jnp.float32)
    out_d = jax.block_until_ready(channel_attention(x3, w1, w2, block_batch=2))
    ref_d = channel_attention_ref(x3, w1, w2)
    assert jnp.allclose(out_d, ref_d, atol=1e-5, rtol=1e-5), "ragged-batch mismatch vs reference"

    print("KERNEL_OK")
</pallas_src>

<mosaic_0001>
module attributes {stable_mosaic.version = 11 : i64} {
  func.func @_ca_kernel(%arg0: i32, %arg1: memref<1x8x256xf32, #tpu.memory_space<vmem>>, %arg2: memref<8x2xf32, #tpu.memory_space<vmem>>, %arg3: memref<2x8xf32, #tpu.memory_space<vmem>>, %arg4: memref<1x1x8xf32, #tpu.memory_space<vmem>>) attributes {dimension_semantics = [#tpu.dimension_semantics<parallel>], iteration_bounds = array<i64: 2>, scalar_prefetch = 0 : i64, scratch_operands = 0 : i64, tpu.core_type = #tpu.core_type<tc>, window_params = [{transform_indices = @transform_0, window_bounds = array<i64: 1, 8, 256>}, {pipeline_mode = #tpu.pipeline_mode<synchronous>, transform_indices = @transform_1, window_bounds = array<i64: 8, 2>}, {pipeline_mode = #tpu.pipeline_mode<synchronous>, transform_indices = @transform_2, window_bounds = array<i64: 2, 8>}, {transform_indices = @transform_3, window_bounds = array<i64: 1, 1, 8>}]} {
    %c0 = arith.constant 0 : index
    %c0_0 = arith.constant 0 : index
    %c0_1 = arith.constant 0 : index
    %0 = vector.load %arg1[%c0, %c0_0, %c0_1] : memref<1x8x256xf32, #tpu.memory_space<vmem>>, vector<1x8x256xf32>
    %cst = arith.constant dense<0.000000e+00> : vector<1x8xf32>
    %1 = vector.multi_reduction <add>, %0, %cst [2] : vector<1x8x256xf32> to vector<1x8xf32>
    %cst_2 = arith.constant 2.560000e+02 : f32
    %2 = vector.broadcast %cst_2 : f32 to vector<1x8xf32>
    %3 = arith.divf %1, %2 : vector<1x8xf32>
    %cst_3 = arith.constant dense<0xFF800000> : vector<1x8xf32>
    %4 = vector.multi_reduction <maximumf>, %0, %cst_3 [2] : vector<1x8x256xf32> to vector<1x8xf32>
    %c0_4 = arith.constant 0 : index
    %c0_5 = arith.constant 0 : index
    %5 = vector.load %arg2[%c0_4, %c0_5] : memref<8x2xf32, #tpu.memory_space<vmem>>, vector<8x2xf32>
    %c0_6 = arith.constant 0 : index
    %c0_7 = arith.constant 0 : index
    %6 = vector.load %arg3[%c0_6, %c0_7] : memref<2x8xf32, #tpu.memory_space<vmem>>, vector<2x8xf32>
    %cst_8 = arith.constant dense<0.000000e+00> : vector<1x2xf32>
    %7 = tpu.matmul %3, %5, %cst_8 {dimension_numbers = #tpu.dot_dimension_numbers<[1], [0], [0], [1], [0, 0, 1, 1], [], []>} : vector<1x8xf32>, vector<8x2xf32>, vector<1x2xf32> -> vector<1x2xf32>
    %cst_9 = arith.constant 0.000000e+00 : f32
    %8 = vector.broadcast %cst_9 : f32 to vector<1x2xf32>
    %9 = arith.maximumf %7, %8 : vector<1x2xf32>
    %cst_10 = arith.constant dense<0.000000e+00> : vector<1x8xf32>
    %10 = tpu.matmul %9, %6, %cst_10 {dimension_numbers = #tpu.dot_dimension_numbers<[1], [0], [0], [1], [0, 0, 1, 1], [], []>} : vector<1x2xf32>, vector<2x8xf32>, vector<1x8xf32> -> vector<1x8xf32>
    %cst_11 = arith.constant dense<0.000000e+00> : vector<1x2xf32>
    %11 = tpu.matmul %4, %5, %cst_11 {dimension_numbers = #tpu.dot_dimension_numbers<[1], [0], [0], [1], [0, 0, 1, 1], [], []>} : vector<1x8xf32>, vector<8x2xf32>, vector<1x2xf32> -> vector<1x2xf32>
    %cst_12 = arith.constant 0.000000e+00 : f32
    %12 = vector.broadcast %cst_12 : f32 to vector<1x2xf32>
    %13 = arith.maximumf %11, %12 : vector<1x2xf32>
    %cst_13 = arith.constant dense<0.000000e+00> : vector<1x8xf32>
    %14 = tpu.matmul %13, %6, %cst_13 {dimension_numbers = #tpu.dot_dimension_numbers<[1], [0], [0], [1], [0, 0, 1, 1], [], []>} : vector<1x2xf32>, vector<2x8xf32>, vector<1x8xf32> -> vector<1x8xf32>
    %15 = arith.addf %10, %14 : vector<1x8xf32>
    %16 = arith.negf %15 : vector<1x8xf32>
    %17 = math.exp %16 : vector<1x8xf32>
    %cst_14 = arith.constant 1.000000e+00 : f32
    %18 = vector.broadcast %cst_14 : f32 to vector<1x8xf32>
    %19 = arith.addf %18, %17 : vector<1x8xf32>
    %20 = arith.divf %18, %19 : vector<1x8xf32>
    %21 = vector.shape_cast %20 : vector<1x8xf32> to vector<1x1x8xf32>
    %c0_15 = arith.constant 0 : index
    %c0_16 = arith.constant 0 : index
    %c0_17 = arith.constant 0 : index
    %22 = vector.load %arg4[%c0_15, %c0_16, %c0_17] : memref<1x1x8xf32, #tpu.memory_space<vmem>>, vector<1x1x8xf32>
    tpu.vector_store %arg4[%c0_15, %c0_16, %c0_17], %21 {strides = array<i32>} : memref<1x1x8xf32, #tpu.memory_space<vmem>>, vector<1x1x8xf32>,
    return
  }
  func.func @transform_0(%arg0: i32) -> (i32, i32, i32) {
    %c0_i32 = arith.constant 0 : i32
    %c0_i32_0 = arith.constant 0 : i32
    %c0_i32_1 = arith.constant 0 : i32
    return %arg0, %c0_i32, %c0_i32_0 : i32, i32, i32
  }
  func.func @transform_1(%arg0: i32) -> (i32, i32) {
    %c0_i32 = arith.constant 0 : i32
    %c0_i32_0 = arith.constant 0 : i32
    %c0_i32_1 = arith.constant 0 : i32
    return %c0_i32, %c0_i32_0 : i32, i32
  }
  func.func @transform_2(%arg0: i32) -> (i32, i32) {
    %c0_i32 = arith.constant 0 : i32
    %c0_i32_0 = arith.constant 0 : i32
    %c0_i32_1 = arith.constant 0 : i32
    return %c0_i32, %c0_i32_0 : i32, i32
  }
  func.func @transform_3(%arg0: i32) -> (i32, i32, i32) {
    %c0_i32 = arith.constant 0 : i32
    %c0_i32_0 = arith.constant 0 : i32
    %c0_i32_1 = arith.constant 0 : i32
    return %arg0, %c0_i32, %c0_i32_0 : i32, i32, i32
  }
}

</mosaic_0001>

<bundles_post_ra>
// kernel: tpu_custom_call.1
= control target key start
LH: loop header
LB: loop body
LE: loop exit
PB: predicated region body
PF: predicated region fallthrough
CT: control target
= control target key end

     0   :  { %8 = vsyncpa [#allocation3], 0  ;;  %s990_s0 = inlined_call_operand.hbm [shape: f32[2,8,256], index: 0, kind: input, shape index: {}]   ;;  %s991_s1 = inlined_call_operand.vmem [shape: f32[8,2], index: 1, kind: input, shape index: {}]   ;;  %s992_s2 = inlined_call_operand.vmem [shape: f32[2,8], index: 2, kind: input, shape index: {}]   ;;  %s993_s3 = inlined_call_operand.hbm [shape: f32[2,1,8], index: 3, kind: output, shape index: {}]  }
   0x1   :  { %10 = vsyncpa [#allocation3 + $0x1], 0 }
   0x2   :  { %11 = vsyncpa [#allocation4], 0 }
   0x3   :  { %13 = vsyncpa [#allocation4 + $0x1], 0  ;;  %s818_s12 = smov 0   ;;  %s820_s13 = smov 0  }
   0x4   :  { %s822_s14 = smov 0   ;;  %s824_s15 = smov 0  }
   0x5 LB: > { %s839_s16 = sadd.s32 4294967295, %s792_s15   ;;  %s595_s17 = sadd.s32 4294967294, %s792_s15   ;;  %s792_s15 = sphi %s824_s15, %s1008_s15   ;;  %s788_s14 = sphi %s822_s14, %s1007_s14   ;;  %s784_s13 = sphi %s820_s13, %s1006_s13   ;;  %s780_s12 = sphi %s818_s12, %s1005_s12  }
   0x6   : > { %s843_s18 = sadd.s32 1, %s792_s15   ;;  %s26_s19 = sadd.s32 1, %s788_s14 }
   0x7   : > { %s23_s20 = ssub.s32 %s792_s15, %s843_s18  ;;  %p33_p0 = scmp.ne.s32.totalorder %s788_s14, %s784_s13 }
   0x8   : > { %p24_p1 = scmp.eq.s32.totalorder %s23_s20, 0  ;;  %p34_p2 = scmp.eq.s32.totalorder %s792_s15, 0 }
   0x9   : > { %p39_p3 = scmp.ne.s32.totalorder %s784_s13, %s780_s12  ;;  %p40_p4 = scmp.eq.s32.totalorder %s839_s16, 0 }
   0xa   : > { %s855_s21 = scalar_select %p24_p1, %s788_s14, %s26_s19  }
   0xb   : > { %p857_p5 = por %p34_p2, %p33_p0  ;;  %p861_p6 = por %p40_p4, %p39_p3 }
   0xc   : > { %p105_p7 = scmp.eq.s32.totalorder %s839_s16, 1  ;;  %p111_p8 = scmp.eq.s32.totalorder %s595_s17, 1 }
   0xd   : > { %p656_p10 = scmp.lt.s32.totalorder %s792_s15, 2  ;;  %s137_s26 = sand.u32 1, %s788_s14  }
   0xe   : > { %p868_p11 = por %p105_p7, %p33_p0  ;;  %p872_p12 = por %p111_p8, %p39_p3 }
   0xf   : > { %s613_s27 = sshll.u32 %s792_s15, 8  ;;  %s598_s28 = sshll.u32 %s137_s26, 4 }
  0x10   : > { %s997_s24 = scalar_select %p868_p11, 1, 0 }
  0x11   : > { %s998_s25 = scalar_select %p872_p12, 1, 0 }
  0x12   : > { %s881_s4 = scalar_lea.hbm %s990_s0, %s613_s27  ;;  %s141_s5 = scalar_lea.vmem [#allocation2], %s598_s28 }
  0x13   : > { %s149_s6 = sshll.u32 %s141_s5, 4  ;;  %p885_p13 = pnand %p656_p10, %p857_p5  ;;  %s889_s6 = int_to_ptr.vmem [resolvable:$true] %s149_s6 }
  0x14   : > { %s138_s8 = scalar_lea.sflag [#allocation3], %s137_s26  ;;  %s696_s9 = scalar_lea.hbm %s881_s4, 256 }
  0x15   : > { %p697_p2 = scmp.ne.s32.totalorder %s881_s4, %s696_s9  ;;  %p698_p3 = pneg %p885_p13 }
  0x16   : > { %s701_s17 = scalar_lea.hbm %s990_s0, 512  ;;  %p702_p5 = scmp.lt.u32.totalorder %s881_s4, %s990_s0 }
  0x17   : > { %p699_p4 = pnand %p698_p3, %p697_p2  ;;  %p703_p8 = scmp.lt.u32.totalorder %s701_s17, %s696_s9 }
  0x18   : > { %p705_p9 = scmp.lt.u32.totalorder %s696_s9, %s881_s4 }
  0x19   : > { %p700_p7 = pneg %p699_p4  ;;  %p704_p10 = por %p703_p8, %p702_p5 }
  0x1b   : > { %p706_p0 = por %p705_p9, %p704_p10 }
  0x1d   : > { %p707_p1 = pnand %p706_p0, %p700_p7 }
  0x1f   : > { %710 = shalt.err (!%p707_p1)
}
  0x20   : > { %s711_s22 = scalar_lea.vmem %s889_s6, 256  ;;  %s794_s26 = smov [#allocation2]  }
  0x21   : > { %p712_p2 = scmp.ne.s32.totalorder %s889_s6, %s711_s22  ;;  %s716_s27 = sshll.u32 %s794_s26, 4  ;;  %s717_s27 = int_to_ptr.vmem [resolvable:$false] %s716_s27 }
  0x22   : > { %s718_s28 = scalar_lea.vmem %s717_s27, 512  ;;  %p719_p11 = scmp.lt.s32.totalorder %s889_s6, %s717_s27 }
  0x23   : > { %p714_p4 = pnand %p712_p2, %p698_p3  ;;  %p720_p5 = scmp.lt.s32.totalorder %s718_s28, %s711_s22 }
  0x25   : > { %p715_p12 = pneg %p714_p4  ;;  %p721_p8 = por %p720_p5, %p719_p11 }
  0x27   : > { %p722_p9 = pnand %p721_p8, %p715_p12 }
  0x29   : > { %725 = shalt.err (!%p722_p9)
}
  0x2a   : > { %651 = dma.hbm_to_vmem [thread:$0]  (!%p885_p13), %s881_s4, 256, %s889_s6, %s138_s8  }
  0x2b   : > { %p1000_p0 = scmp.lt.s32.totalorder %s792_s15, 3  ;;  %p1001_p1 = scmp.ge.s32.totalorder %s792_s15, 1 }
  0x2d   : > { %p155_p3 = pnand %p1001_p1, %p1000_p0 }
  0x2e   : > { %s923_s29 = sand.u32 (!%p155_p3), 1, %s784_s13  }
  0x2f   : > { %158 = sbr.rel (%p155_p3) target bundleno = 682 (0x2aa), region = 32  ;;  %s602_s30 = sshll.u32 (!%p155_p3), %s923_s29, 4 }
  0x30   : > { %s161_s5 = scalar_lea.sflag (!%p155_p3), [#allocation3], %s923_s29  ;;  %s164_s9 = scalar_lea.vmem (!%p155_p3), [#allocation2], %s602_s30 }
  0x36   : > { %771 = dma.done.wait (%p861_p6), %s161_s5, 256  }
  0x37   : > { %773 = vsyncadd (%p861_p6), %s161_s5, 4294967040  ;;  %v186_v0 = vld [vmem:[%s164_s9] sm:$0xff]  ;;  %v187_v1 = vld [vmem:[%s164_s9 + $0x8] sm:$0xff]  ;;  %v795_v4 = vmov 0.0   ;;  %vm796_vm0 = vmmov 0   ;;  %v199_v6 = vlaneseq  ;;  %vm205_vm1 = vcmask 64512  }
  0x38   : > { %v188_v2 = vadd.f32 %v187_v1, %v186_v0  ;;  %v193_v3 = vmax.f32 %v186_v0, %v187_v1  ;;  %622 = vmatprep.subr.mxu1 %v795_v4  ;;  %v196_v5 = vld [vmem:[%s991_s1] sm:$0xff]  ;;  %632 = vmatprep.subr.mxu0 %v795_v4  ;;  %vm361_vm2 = vcmask 1041408   ;;  %vm357_vm3 = vcmask 15360   ;;  %s610_s8 = sshll.u32 %s839_s16, 4  ;;  %s185_s10 = scalar_lea.vmem [#allocation5], %s923_s29 }
  0x39   : > { %623 = vmatpush3.msra.mxu1 %v196_v5  ;;  %624 = vmatprep.mubr.msk.f32.mxu1 %vm796_vm0, %v795_v4  ;;  %v200_v7 = vand.u32 127, %v199_v6  ;;  %v202_v8 = vshrl.u32 %v199_v6, 7  ;;  %v197_v15 = vld [vmem:[%s992_s2] sm:$0x3]  ;;  %s529_s11 = sshll.u32 %s185_s10, 4  ;;  %vm514_vm4 = vcmask 57344   ;;  %s946_s20 = scalar_lea.hbm %s993_s3, %s610_s8  ;;  %s948_s11 = int_to_ptr.vmem [resolvable:$true] %s529_s11 }
  0x3a   : > { %189 = vadd.xlane.f32.xlu0 %v188_v2  ;;  %627 = vmatprep.subr.mxu1 %v795_v4  ;;  %s517_s22 = scalar_lea.sflag [#allocation4], %s923_s29  ;;  %s726_s26 = scalar_lea.vmem %s948_s11, 16 }
  0x3b   : > { %634 = vmatprep.mubr.msk.f32.mxu0 %vm796_vm0, %v795_v4  ;;  %v203_v9 = vsub.s32 %v200_v7, %v202_v8  ;;  %633 = vmatpush3.msk.msra.mxu0 %vm361_vm2, %v197_v15  ;;  %p727_p6 = scmp.ne.s32.totalorder %s948_s11, %s726_s26  ;;  %p1002_p11 = scmp.ne.s32.totalorder %s997_s24, 0 }
  0x3c   : > { %637 = vmatprep.subr.mxu0 %v795_v4  ;;  %s797_s16 = smov [#allocation5]  }
  0x3d   : > { %p728_p12 = pnand %p727_p6, %p1002_p11  ;;  %s730_s27 = sshll.u32 %s797_s16, 4  ;;  %s731_s27 = int_to_ptr.vmem [resolvable:$false] %s730_s27 }
  0x3e   : > { %194 = vmax.xlane.f32.xlu0 %v193_v3  ;;  %s732_s28 = scalar_lea.vmem %s731_s27, 32  ;;  %p733_p7 = scmp.lt.s32.totalorder %s948_s11, %s731_s27 }
  0x3f   : > { %p729_p13 = pneg %p728_p12  ;;  %p734_p10 = scmp.lt.s32.totalorder %s732_s28, %s726_s26 }
  0x41   : > { %p735_p2 = por %p734_p10, %p733_p7 }
  0x43   : > { %p736_p4 = pnand %p735_p2, %p729_p13 }
  0xc7   : > { %v190_v10 = vpop.xlane.xlu0 %189 }
  0xc8   : > { %v192_v11 = vmul.f32 0.00390625, %v190_v10 }
  0xca   : > { %v204_v12 = vrot.slane %v192_v11, %v203_v9 }
  0xcb   : > { %v195_v13 = vpop.xlane.xlu0 %194 }
  0xcc   : > { %625 = vmatmul.mubr.msk.f32.vlgmr.msra.gmra.mrb[0].mxu1 %vm205_vm1, %v204_v12  ;;  %v283_v14 = vrot.slane %v195_v13, %v203_v9 }
  0xcd   : > { %628 = vmatpush3.msra.mxu1 %v196_v5  ;;  %629 = vmatprep.mubr.msk.f32.mxu1 %vm796_vm0, %v795_v4 }
  0xd0   : > { %630 = vmatmul.mubr.msk.f32.vlgmr.msra.gmra.mrb[2].mxu1 %vm205_vm1, %v283_v14 }
 0x19f   : > { %v274_v16 = vpop.f32.mrb[0].mxu1 }
 0x1a0   : > { %v626_v17 = vpop.f32.mrb[1].mxu1  ;;  %v278_v21 = vmax.f32 %v274_v16, 0.0 }
 0x1a3   : > { %v352_v18 = vpop.f32.mrb[2].mxu1 }
 0x1a4   : > { %v356_v19 = vmax.f32 %v352_v18, 0.0  ;;  %v631_v20 = vpop.f32.mrb[3].mxu1 }
 0x1a6   : > { %635 = vmatmul.mubr.msk.f32.vlgmr.msra.gmra.mrb[0].mxu0 %vm357_vm3, %v356_v19 }
 0x1a7   : > { %638 = vmatpush3.msk.msra.mxu0 %vm361_vm2, %v197_v15  ;;  %639 = vmatprep.mubr.msk.f32.mxu0 %vm796_vm0, %v795_v4 }
 0x1ae   : > { %640 = vmatmul.mubr.msk.f32.vlgmr.msra.gmra.mrb[0].mxu0 %vm357_vm3, %v278_v21 }
 0x281   : > { %v504_v22 = vpop.f32.mrb[0].mxu0 }
 0x282   : > { %v609_v23 = vmul.f32 -1.442695, %v504_v22  ;;  %v641_v24 = vpop.f32.mrb[1].mxu0 }
 0x284   : > { %692 = vpow2.f32 %v609_v23 }
 0x28e   : > { %v693_v25 = vpop.eup %692 }
 0x28f   : > { %v511_v26 = vadd.f32 1.0, %v693_v25 }
 0x291   : > { %694 = vrcp.f32 %v511_v26 }
 0x29b   : > { %v695_v27 = vpop.eup %694 }
 0x29c   : > { %515 = vst.msk [vmem:[%s185_s10] sm:$0x1] %vm514_vm4, %v695_v27 }
 0x29d   : > { %739 = shalt.err (!%p736_p4)
}
 0x29e   : > { %s740_s29 = scalar_lea.hbm %s946_s20, 16  ;;  %s744_s9 = scalar_lea.hbm %s993_s3, 32 }
 0x29f   : > { %p741_p5 = scmp.ne.s32.totalorder %s946_s20, %s740_s29  ;;  %p745_p0 = scmp.lt.u32.totalorder %s946_s20, %s993_s3 }
 0x2a0   : > { %p746_p1 = scmp.lt.u32.totalorder %s744_s9, %s740_s29  ;;  %p748_p6 = scmp.lt.u32.totalorder %s740_s29, %s946_s20 }
 0x2a1   : > { %p742_p8 = pnand %p741_p5, %p1002_p11 }
 0x2a2   : > { %p747_p3 = por %p746_p1, %p745_p0 }
 0x2a3   : > { %p743_p9 = pneg %p742_p8 }
 0x2a4   : > { %p749_p12 = por %p748_p6, %p747_p3 }
 0x2a6   : > { %p750_p13 = pnand %p749_p12, %p743_p9 }
 0x2a8   : > { %753 = shalt.err (!%p750_p13)
}
 0x2a9   : > { %646 = dma.vmem_to_hbm [thread:$0]  (%p1002_p11), %s948_s11, 16, %s946_s20, %s517_s22  }
 0x2aa PF: > { %s541_s23 = sand.u32 1, %s780_s12   ;;  %p1003_p7 = scmp.ne.s32.totalorder %s998_s25, 0 }
 0x2ab   : > { %p1004_p10 = scmp.ge.s32.totalorder %s792_s15, 2  ;;  %s542_s7 = scalar_lea.sflag [#allocation4], %s541_s23 }
 0x2ad   : > { %p653_p2 = pnand %p1004_p10, %p1003_p7 }
 0x2af   : > { %775 = dma.done.wait (!%p653_p2), %s542_s7, 16  }
 0x2b0   : > { %777 = vsyncadd (!%p653_p2), %s542_s7, 4294967280  ;;  %p16_p4 = scmp.ge.s32.totalorder %s843_s18, 4   ;;  %s1005_s12 = smov %s784_s13 }
 0x2b1   : > { %s1006_s13 = smov %s788_s14  ;;  %s1007_s14 = smov %s855_s21 }
 0x2b2   : > { %s1008_s15 = smov %s843_s18  ;;  %18 = sbr.rel (!%p16_p4) target bundleno = 5 (0x5), region = 77 }
 0x2b9   :  { %546 = vsyncpa [#allocation3], 1 }
 0x2ba   :  { %548 = vsyncpa [#allocation3 + $0x1], 1 }
 0x2bb   :  { %549 = vsyncpa [#allocation4], 1 }
 0x2bc   :  { %551 = vsyncpa [#allocation4 + $0x1], 1 }

</bundles_post_ra>
